<compile_context>
chip_gen: v7x
topology: tpu7x:2x2x1
jax: 0.10.0
libtpu: 0.0.40
codegen_flags: <defaults>
</compile_context>

<pallas_src>
import functools

import jax
import jax.numpy as jnp
from jax import lax
from jax.experimental import pallas as pl
from jax.experimental.pallas import tpu as pltpu


def _round_up(x, m):
    return ((x + m - 1) // m) * m


def _cdiv(a, b):
    return (a + b - 1) // b


# ---------------------------------------------------------------------------
# Kernel helpers (run inside the Pallas kernel body)
# ---------------------------------------------------------------------------

def _gather_rows(idx_ref, table_ref):
    """gathered[r, :] = table[idx[r], :] via an exact one-hot MXU matmul.

    idx_ref:   (TR, 1) int32 VMEM column (tokens for this tile)
    table_ref: (Vr, Vp) f32, VMEM-resident for the whole grid
    Returns a (TR, Vp) f32 value kept in vregs (reused for store + loss picks).
    The one-hot entries are exact 0.0/1.0 and the matmul runs at HIGHEST
    precision, so the gathered rows match the f32 table rows to ~1 ulp.
    """
    tok = idx_ref[...]                                           # (TR, 1) int32
    tr = tok.shape[0]
    vr = table_ref.shape[0]
    vocab_iota = lax.broadcasted_iota(jnp.int32, (tr, vr), 1)    # (TR, Vr)
    onehot = (vocab_iota == tok).astype(jnp.float32)             # exact 0/1
    return jnp.dot(onehot, table_ref[...],
                   preferred_element_type=jnp.float32,
                   precision=lax.Precision.HIGHEST)              # (TR, Vp) f32


def _ce_partial(gathered, tgt_ref, *, lse_col, n_valid):
    """Per-tile sum of (lse[idx] - logit[idx, tgt]) over the valid rows."""
    tr, vp = gathered.shape
    cols = lax.broadcasted_iota(jnp.int32, (tr, vp), 1)          # (TR, Vp)
    tgt = tgt_ref[...]                                           # (TR, 1) int32
    # Precomputed per-vocab-row logsumexp lives in (static) column `lse_col`;
    # both picks are a single compare+select, no exp/log work in the kernel.
    contrib = (jnp.where(cols == lse_col, gathered, 0.0)
               - jnp.where(cols == tgt, gathered, 0.0))
    per_row = jnp.sum(contrib, axis=-1, keepdims=True)           # (TR, 1)
    rows = (pl.program_id(0) * tr
            + lax.broadcasted_iota(jnp.int32, (tr, 1), 0))
    per_row = jnp.where(rows < n_valid, per_row, 0.0)            # mask padded rows
    return jnp.sum(per_row)


# ---------------------------------------------------------------------------
# Kernels
# ---------------------------------------------------------------------------

def _logits_kernel(idx_ref, table_ref, logits_ref):
    logits_ref[...] = _gather_rows(idx_ref, table_ref).astype(logits_ref.dtype)


def _loss_logits_kernel(idx_ref, tgt_ref, table_ref, logits_ref, partial_ref, *,
                        lse_col, n_valid):
    gathered = _gather_rows(idx_ref, table_ref)                  # stays in vregs
    logits_ref[...] = gathered.astype(logits_ref.dtype)
    s = _ce_partial(gathered, tgt_ref, lse_col=lse_col, n_valid=n_valid)
    partial_ref[...] = jnp.broadcast_to(s, (1, 1, 128)).astype(jnp.float32)


def _loss_only_kernel(idx_ref, tgt_ref, table_ref, partial_ref, *,
                      lse_col, n_valid):
    gathered = _gather_rows(idx_ref, table_ref)
    s = _ce_partial(gathered, tgt_ref, lse_col=lse_col, n_valid=n_valid)
    partial_ref[...] = jnp.broadcast_to(s, (1, 1, 128)).astype(jnp.float32)


# ---------------------------------------------------------------------------
# Wrapper (forward pass of BigramLanguageModel)
# ---------------------------------------------------------------------------

def bigram_forward(idx, table, targets=None, *, block_rows=2048,
                   return_logits=True, logits_dtype=jnp.float32):
    """Pallas equivalent of BigramLanguageModel.forward.

    Returns (logits, loss).  Matching the PyTorch module, logits are (B, T, V)
    when targets is None and (B*T, V) when targets are given.  With
    return_logits=False (training, loss only) logits is None and the dominant
    (N, Vp) HBM writeback is skipped entirely.
    Assumes the vocab table fits in VMEM (char-level bigram model).
    """
    B, T = idx.shape
    V = table.shape[0]
    N = B * T
    with_loss = targets is not None

    # Lane-dense logits width; the loss path carries the precomputed per-vocab-row
    # logsumexp as one extra column at static index V (hoisted out of the kernel).
    Vp = _round_up(V + 1, 128) if with_loss else _round_up(V, 128)
    Vr = _round_up(V, 128)          # table rows padded for the MXU contraction dim

    # Row tile: large by default to amortize per-grid-step overhead; clamp for tiny
    # N and so the in-kernel one-hot + gathered temporaries stay well inside VMEM.
    max_tr = max(8, ((24 << 20) // (4 * (Vr + 2 * Vp))) // 8 * 8)
    TR = min(_round_up(block_rows, 8), _round_up(N, 8), max_tr)
    num_tiles = _cdiv(N, TR)
    if num_tiles > 1 and num_tiles % 2 == 1:
        # v7x has two TensorCores; keep the single parallel grid axis even.
        num_tiles += 1
        TR = _round_up(_cdiv(N, num_tiles), 8)
    N_pad = num_tiles * TR

    # Build the (row/lane padded) table; pad value is 0 (padded columns are never
    # selected because targets < V, and padded rows are never gathered).
    table_f32 = table.astype(jnp.float32)
    if with_loss:
        lse = jax.nn.logsumexp(table_f32, axis=-1, keepdims=True)     # (V, 1)
        table_aug = jnp.concatenate([table_f32, lse], axis=1)         # (V, V+1)
    else:
        table_aug = table_f32
    table_p = jnp.pad(table_aug,
                      ((0, Vr - V), (0, Vp - table_aug.shape[1])))

    idx_col = jnp.pad(idx.reshape(N).astype(jnp.int32),
                      (0, N_pad - N)).reshape(N_pad, 1)

    idx_spec = pl.BlockSpec((TR, 1), lambda i: (i, 0))
    table_spec = pl.BlockSpec((Vr, Vp), lambda i: (0, 0))             # VMEM-resident
    logits_spec = pl.BlockSpec((TR, Vp), lambda i: (i, 0))

    # Tight VMEM budget from the real footprint (double-buffered inputs/outputs,
    # lane-padded (TR,1) columns, f32 one-hot + gathered temporaries) + slack.
    itemsize = jnp.dtype(logits_dtype).itemsize
    col_bytes = TR * 128 * 4                 # (TR, 1) int32 pads to 128 lanes
    table_bytes = Vr * Vp * 4
    logits_bytes = TR * Vp * itemsize
    temps_bytes = TR * (Vr + Vp) * 4
    need = (2 * table_bytes + 2 * col_bytes
            + (2 * col_bytes if with_loss else 0)
            + (2 * logits_bytes if (return_logits or not with_loss) else 0)
            + temps_bytes)
    vmem_limit = int(min(need + (8 << 20), 48 << 20))
    compiler_params = pltpu.CompilerParams(
        dimension_semantics=("parallel",),   # tiles are fully independent
        vmem_limit_bytes=vmem_limit,
    )

    if not with_loss:
        cost = pl.CostEstimate(
            flops=2 * N_pad * Vr * Vp,
            transcendentals=0,
            bytes_accessed=N_pad * Vp * itemsize + table_bytes + 4 * N_pad)
        logits_pad = pl.pallas_call(
            _logits_kernel,
            out_shape=jax.ShapeDtypeStruct((N_pad, Vp), logits_dtype),
            grid_spec=pltpu.PrefetchScalarGridSpec(
                num_scalar_prefetch=0,
                grid=(num_tiles,),
                in_specs=[idx_spec, table_spec],
                out_specs=logits_spec),
            compiler_params=compiler_params,
            cost_estimate=cost,
        )(idx_col, table_p)
        logits = logits_pad[:N, :V].reshape(B, T, V)
        return logits, None

    tgt_col = jnp.pad(targets.reshape(N).astype(jnp.int32),
                      (0, N_pad - N)).reshape(N_pad, 1)
    tgt_spec = pl.BlockSpec((TR, 1), lambda i: (i, 0))
    partial_spec = pl.BlockSpec((1, 1, 128), lambda i: (i, 0, 0))
    partial_shape = jax.ShapeDtypeStruct((num_tiles, 1, 128), jnp.float32)

    if return_logits:
        kern = functools.partial(_loss_logits_kernel, lse_col=V, n_valid=N)
        cost = pl.CostEstimate(
            flops=2 * N_pad * Vr * Vp + 6 * N_pad * Vp,
            transcendentals=0,
            bytes_accessed=N_pad * Vp * itemsize + table_bytes + 8 * N_pad
                           + num_tiles * 128 * 4)
        logits_pad, partials = pl.pallas_call(
            kern,
            out_shape=(jax.ShapeDtypeStruct((N_pad, Vp), logits_dtype),
                       partial_shape),
            grid_spec=pltpu.PrefetchScalarGridSpec(
                num_scalar_prefetch=0,
                grid=(num_tiles,),
                in_specs=[idx_spec, tgt_spec, table_spec],
                out_specs=(logits_spec, partial_spec)),
            compiler_params=compiler_params,
            cost_estimate=cost,
        )(idx_col, tgt_col, table_p)
        loss = partials[:, 0, 0].sum() / N
        # PyTorch returns the flattened (B*T, C) view when targets are given.
        logits = logits_pad[:N, :V].reshape(N, V)
        return logits, loss

    # Loss-only: no (N_pad, Vp) logits writeback at all (per-row HBM ~8 B).
    kern = functools.partial(_loss_only_kernel, lse_col=V, n_valid=N)
    cost = pl.CostEstimate(
        flops=2 * N_pad * Vr * Vp + 6 * N_pad * Vp,
        transcendentals=0,
        bytes_accessed=table_bytes + 8 * N_pad + num_tiles * 128 * 4)
    partials = pl.pallas_call(
        kern,
        out_shape=partial_shape,
        grid_spec=pltpu.PrefetchScalarGridSpec(
            num_scalar_prefetch=0,
            grid=(num_tiles,),
            in_specs=[idx_spec, tgt_spec, table_spec],
            out_specs=partial_spec),
        compiler_params=compiler_params,
        cost_estimate=cost,
    )(idx_col, tgt_col, table_p)
    loss = partials[:, 0, 0].sum() / N
    return None, loss


# ---------------------------------------------------------------------------
# Pure-JAX reference (mirrors the PyTorch module)
# ---------------------------------------------------------------------------

def _reference_forward(idx, table, targets=None):
    logits = table[idx]                         # (B, T, V)
    if targets is None:
        return logits, None
    B, T, V = logits.shape
    flat = logits.reshape(B * T, V)
    tgt = targets.reshape(B * T)
    lse = jax.nn.logsumexp(flat, axis=-1)
    picked = flat[jnp.arange(B * T), tgt]
    return flat, jnp.mean(lse - picked)         # torch returns (B*T, C) logits here


if __name__ == "__main__":
    vocab_size = 65   # char-level vocab (exercises V -> 128 lane padding)
    B, T = 2, 8

    key = jax.random.PRNGKey(0)
    k_tab, k_idx, k_tgt = jax.random.split(key, 3)

    # nn.Embedding default init: N(0, 1)
    table = jax.random.normal(k_tab, (vocab_size, vocab_size), dtype=jnp.float32)
    idx = jax.random.randint(k_idx, (B, T), 0, vocab_size, dtype=jnp.int32)
    targets = jax.random.randint(k_tgt, (B, T), 0, vocab_size, dtype=jnp.int32)

    ref_logits, ref_loss = _reference_forward(idx, table, targets)

    # Training path: logits + loss.
    logits, loss = bigram_forward(idx, table, targets)
    logits, loss = jax.block_until_ready((logits, loss))
    assert logits.shape == (B * T, vocab_size)
    assert jnp.allclose(logits, ref_logits, atol=1e-5)
    assert jnp.allclose(loss, ref_loss, atol=1e-5, rtol=1e-5)

    # Inference path (targets=None): gather-only kernel, (B, T, V) logits, no loss.
    logits_inf, no_loss = bigram_forward(idx, table, None)
    jax.block_until_ready(logits_inf)
    assert no_loss is None
    assert logits_inf.shape == (B, T, vocab_size)
    assert jnp.allclose(logits_inf.reshape(B * T, vocab_size), ref_logits, atol=1e-5)

    # Loss-only training path: skips the logits HBM writeback entirely.
    none_logits, loss_only = bigram_forward(idx, table, targets, return_logits=False)
    loss_only = jax.block_until_ready(loss_only)
    assert none_logits is None
    assert jnp.allclose(loss_only, ref_loss, atol=1e-5, rtol=1e-5)

    # bf16 logits output option: loss stays f32-accurate (computed from f32 vregs).
    logits_bf16, loss_bf16 = bigram_forward(idx, table, targets,
                                            logits_dtype=jnp.bfloat16)
    logits_bf16, loss_bf16 = jax.block_until_ready((logits_bf16, loss_bf16))
    assert logits_bf16.dtype == jnp.bfloat16
    assert jnp.allclose(loss_bf16, ref_loss, atol=1e-5, rtol=1e-5)
    assert jnp.allclose(logits_bf16.astype(jnp.float32), ref_logits, atol=5e-2)

    # Ragged multi-tile case: N=21 with 8-row tiles -> even parallel grid + masking.
    idx2 = jax.random.randint(k_idx, (3, 7), 0, vocab_size, dtype=jnp.int32)
    tgt2 = jax.random.randint(k_tgt, (3, 7), 0, vocab_size, dtype=jnp.int32)
    l2, loss2 = bigram_forward(idx2, table, tgt2, block_rows=8)
    l2, loss2 = jax.block_until_ready((l2, loss2))
    rl2, rloss2 = _reference_forward(idx2, table, tgt2)
    assert jnp.allclose(l2, rl2, atol=1e-5)
    assert jnp.allclose(loss2, rloss2, atol=1e-5, rtol=1e-5)

    print("KERNEL_OK")
</pallas_src>

<mosaic_0001>
module attributes {stable_mosaic.version = 11 : i64} {
  func.func @_loss_logits_kernel(%arg0: i32, %arg1: memref<16x1xi32, #tpu.memory_space<vmem>>, %arg2: memref<16x1xi32, #tpu.memory_space<vmem>>, %arg3: memref<128x128xf32, #tpu.memory_space<vmem>>, %arg4: memref<16x128xf32, #tpu.memory_space<vmem>>, %arg5: memref<1x1x128xf32, #tpu.memory_space<vmem>>) attributes {dimension_semantics = [#tpu.dimension_semantics<parallel>], iteration_bounds = array<i64: 1>, scalar_prefetch = 0 : i64, scratch_operands = 0 : i64, tpu.core_type = #tpu.core_type<tc>, window_params = [{transform_indices = @transform_0, window_bounds = array<i64: 16, 1>}, {transform_indices = @transform_1, window_bounds = array<i64: 16, 1>}, {pipeline_mode = #tpu.pipeline_mode<synchronous>, transform_indices = @transform_2, window_bounds = array<i64: 128, 128>}, {transform_indices = @transform_3, window_bounds = array<i64: 16, 128>}, {transform_indices = @transform_4, window_bounds = array<i64: 1, 1, 128>}]} {
    %c0 = arith.constant 0 : index
    %c0_0 = arith.constant 0 : index
    %0 = vector.load %arg1[%c0, %c0_0] : memref<16x1xi32, #tpu.memory_space<vmem>>, vector<16x1xi32>
    %1 = tpu.iota {dimensions = array<i32: 1>} : vector<16x128xi32>
    %2 = vector.broadcast %0 : vector<16x1xi32> to vector<16x128xi32>
    %3 = arith.cmpi eq, %1, %2 : vector<16x128xi32>
    %4 = arith.extui %3 : vector<16x128xi1> to vector<16x128xi32>
    %5 = arith.sitofp %4 : vector<16x128xi32> to vector<16x128xf32>
    %c0_1 = arith.constant 0 : index
    %c0_2 = arith.constant 0 : index
    %6 = vector.load %arg3[%c0_1, %c0_2] : memref<128x128xf32, #tpu.memory_space<vmem>>, vector<128x128xf32>
    %cst = arith.constant dense<0.000000e+00> : vector<16x128xf32>
    %7 = tpu.matmul %5, %6, %cst {dimension_numbers = #tpu.dot_dimension_numbers<[1], [0], [0], [1], [0, 0, 1, 1], [], []>, precision = #tpu.contract_precision<fp32>} : vector<16x128xf32>, vector<128x128xf32>, vector<16x128xf32> -> vector<16x128xf32>
    %c0_3 = arith.constant 0 : index
    %c0_4 = arith.constant 0 : index
    %8 = vector.load %arg4[%c0_3, %c0_4] : memref<16x128xf32, #tpu.memory_space<vmem>>, vector<16x128xf32>
    tpu.vector_store %arg4[%c0_3, %c0_4], %7 {strides = array<i32>} : memref<16x128xf32, #tpu.memory_space<vmem>>, vector<16x128xf32>,
    %9 = tpu.iota {dimensions = array<i32: 1>} : vector<16x128xi32>
    %c0_5 = arith.constant 0 : index
    %c0_6 = arith.constant 0 : index
    %10 = vector.load %arg2[%c0_5, %c0_6] : memref<16x1xi32, #tpu.memory_space<vmem>>, vector<16x1xi32>
    %c65_i32 = arith.constant 65 : i32
    %11 = vector.broadcast %c65_i32 : i32 to vector<16x128xi32>
    %12 = arith.cmpi eq, %9, %11 : vector<16x128xi32>
    %cst_7 = arith.constant 0.000000e+00 : f32
    %13 = vector.broadcast %cst_7 : f32 to vector<16x128xf32>
    %14 = arith.select %12, %7, %13 : vector<16x128xi1>, vector<16x128xf32>
    %15 = vector.broadcast %10 : vector<16x1xi32> to vector<16x128xi32>
    %16 = arith.cmpi eq, %9, %15 : vector<16x128xi32>
    %cst_8 = arith.constant 0.000000e+00 : f32
    %17 = vector.broadcast %cst_8 : f32 to vector<16x128xf32>
    %18 = arith.select %16, %7, %17 : vector<16x128xi1>, vector<16x128xf32>
    %19 = arith.subf %14, %18 : vector<16x128xf32>
    %cst_9 = arith.constant dense<0.000000e+00> : vector<16xf32>
    %20 = vector.multi_reduction <add>, %19, %cst_9 [1] : vector<16x128xf32> to vector<16xf32>
    %21 = vector.shape_cast %20 : vector<16xf32> to vector<16x1xf32>
    %c16_i32 = arith.constant 16 : i32
    %22 = arith.muli %arg0, %c16_i32 : i32
    %23 = tpu.iota {dimensions = array<i32: 0>} : vector<16x1xi32>
    %24 = vector.broadcast %22 : i32 to vector<16x1xi32>
    %25 = arith.addi %24, %23 : vector<16x1xi32>
    %c16_i32_10 = arith.constant 16 : i32
    %26 = vector.broadcast %c16_i32_10 : i32 to vector<16x1xi32>
    %27 = arith.cmpi slt, %25, %26 : vector<16x1xi32>
    %cst_11 = arith.constant 0.000000e+00 : f32
    %28 = vector.broadcast %cst_11 : f32 to vector<16x1xf32>
    %29 = arith.select %27, %21, %28 : vector<16x1xi1>, vector<16x1xf32>
    %30 = vector.shape_cast %29 : vector<16x1xf32> to vector<1x16x1xf32>
    %cst_12 = arith.constant dense<0.000000e+00> : vector<1xf32>
    %31 = vector.multi_reduction <add>, %30, %cst_12 [1, 2] : vector<1x16x1xf32> to vector<1xf32>
    %32 = vector.shape_cast %31 : vector<1xf32> to vector<1x1x1xf32>
    %33 = vector.extract %32[0, 0, 0] : f32 from vector<1x1x1xf32>
    %34 = vector.broadcast %33 : f32 to vector<1x1x128xf32>
    %c0_13 = arith.constant 0 : index
    %c0_14 = arith.constant 0 : index
    %c0_15 = arith.constant 0 : index
    %35 = vector.load %arg5[%c0_13, %c0_14, %c0_15] : memref<1x1x128xf32, #tpu.memory_space<vmem>>, vector<1x1x128xf32>
    tpu.vector_store %arg5[%c0_13, %c0_14, %c0_15], %34 {strides = array<i32>} : memref<1x1x128xf32, #tpu.memory_space<vmem>>, vector<1x1x128xf32>,
    return
  }
  func.func @transform_0(%arg0: i32) -> (i32, i32) {
    %c0_i32 = arith.constant 0 : i32
    %c0_i32_0 = arith.constant 0 : i32
    return %arg0, %c0_i32 : i32, i32
  }
  func.func @transform_1(%arg0: i32) -> (i32, i32) {
    %c0_i32 = arith.constant 0 : i32
    %c0_i32_0 = arith.constant 0 : i32
    return %arg0, %c0_i32 : i32, i32
  }
  func.func @transform_2(%arg0: i32) -> (i32, i32) {
    %c0_i32 = arith.constant 0 : i32
    %c0_i32_0 = arith.constant 0 : i32
    %c0_i32_1 = arith.constant 0 : i32
    return %c0_i32, %c0_i32_0 : i32, i32
  }
  func.func @transform_3(%arg0: i32) -> (i32, i32) {
    %c0_i32 = arith.constant 0 : i32
    %c0_i32_0 = arith.constant 0 : i32
    return %arg0, %c0_i32 : i32, i32
  }
  func.func @transform_4(%arg0: i32) -> (i32, i32, i32) {
    %c0_i32 = arith.constant 0 : i32
    %c0_i32_0 = arith.constant 0 : i32
    %c0_i32_1 = arith.constant 0 : i32
    return %arg0, %c0_i32, %c0_i32_0 : i32, i32, i32
  }
}

</mosaic_0001>

<bundles_post_ra>
// kernel: tpu_custom_call.1
= control target key start
LH: loop header
LB: loop body
LE: loop exit
PB: predicated region body
PF: predicated region fallthrough
CT: control target
= control target key end

     0   :  { %10 = vsyncpa [#allocation3], 0  ;;  %s1790_s0 = inlined_call_operand.vmem [shape: s32[16,1], index: 0, kind: input, shape index: {}]   ;;  %s1791_s1 = inlined_call_operand.vmem [shape: s32[16,1], index: 1, kind: input, shape index: {}]   ;;  %s1792_s2 = inlined_call_operand.hbm [shape: f32[128,128], index: 2, kind: input, shape index: {}]   ;;  %s1793_s3 = inlined_call_operand.hbm [shape: f32[16,128], index: 3, kind: output, shape index: {0}]   ;;  %s1794_s4 = inlined_call_operand.hbm [shape: f32[1,1,128], index: 4, kind: output, shape index: {1}]  }
   0x1   :  { %11 = vsyncpa [#allocation4], 0 }
   0x2   :  { %12 = vsyncpa [#allocation7], 0  ;;  %s1440_s15 = smov [#allocation2]   ;;  %s1368_s19 = scalar_lea.hbm %s1792_s2, 2048 }
   0x3   :  { %s22_s16 = sshll.u32 %s1440_s15, 4  ;;  %p1369_p0 = scmp.ne.s32.totalorder %s1792_s2, %s1368_s19  ;;  %s23_s16 = int_to_ptr.vmem [resolvable:$true] %s22_s16 }
   0x4   :  { %p1372_p1 = scmp.lt.u32.totalorder %s1368_s19, %s1792_s2 }
   0x6   :  { %p1374_p2 = pnand %p1372_p1, %p1369_p0 }
   0x8   :  { %1377 = shalt.err (!%p1374_p2)
}
   0x9   :  { %s1378_s24 = scalar_lea.vmem %s23_s16, 2048  ;;  %p1383_p4 = scmp.lt.s32.totalorder %s23_s16, %s23_s16 }
   0xa   :  { %p1379_p3 = scmp.ne.s32.totalorder %s23_s16, %s1378_s24  ;;  %p1384_p5 = scmp.lt.s32.totalorder %s1378_s24, %s1378_s24 }
   0xc   :  { %p1385_p6 = por %p1384_p5, %p1383_p4 }
   0xe   :  { %p1386_p7 = pnand %p1385_p6, %p1379_p3 }
  0x10   :  { %1389 = shalt.err (!%p1386_p7)
}
  0x11   :  { %s1441_s25 = smov 128   ;;  %s1442_s26 = smov 8  }
  0x12   :  { %28 = dma.hbm_to_vmem [thread:$0]  %s1792_s2, 2048, %s23_s16, [#allocation3], %s1441_s25, %s1441_s25, %s1442_s26  }
  0x13   :  { %1434 = dma.done.wait [#allocation3], 2048  }
  0x14   :  { %1435 = vsyncadd [#allocation3], 4294965248  ;;  %v1443_v0 = vmov 0   ;;  %v32_v1 = vld [vmem:[%s1790_s0] sm:$0xff]  ;;  %v49_v3 = vld [vmem:[#allocation2 + $0x8] sm:$0xff]  ;;  %vm782_vm5 = vcmask 7168  }
  0x15   :  { %1366 = vset.pattern.permute.xlu0 %v1443_v0  ;;  %1367 = vset.pattern.permute.xlu1 %v1443_v0  ;;  %v48_v2 = vld [vmem:[#allocation2] sm:$0xff]  ;;  %v50_v5 = vld [vmem:[#allocation2 + $0x10] sm:$0xff]  ;;  %v51_v6 = vld [vmem:[#allocation2 + $0x18] sm:$0xff]  ;;  %v68_v8 = vand.u32 4294901760, %v49_v3 }
  0x16   :  { %37 = vperm.xlu0 %1366, %v32_v1   ;;  %v65_v4 = vand.u32 4294901760, %v48_v2  ;;  %v33_v7 = vld [vmem:[%s1790_s0 + $0x8] sm:$0xff]  ;;  %v71_v9 = vand.u32 4294901760, %v50_v5  ;;  %v74_v10 = vand.u32 4294901760, %v51_v6  ;;  %v52_v11 = vld [vmem:[#allocation2 + $0x20] sm:$0xff]  ;;  %v54_v17 = vld [vmem:[#allocation2 + $0x30] sm:$0xff] }
  0x17   :  { %v53_v12 = vld [vmem:[#allocation2 + $0x28] sm:$0xff]  ;;  %v77_v15 = vand.u32 4294901760, %v52_v11  ;;  %v55_v18 = vld [vmem:[#allocation2 + $0x38] sm:$0xff]  ;;  %v83_v20 = vand.u32 4294901760, %v54_v17  ;;  %v56_v22 = vld [vmem:[#allocation2 + $0x40] sm:$0xff]  ;;  %v1544_v46 = vsub.f32 %v49_v3, %v68_v8 }
  0x18   :  { %v1494_v13 = vpack.c.bf16 %v68_v8, %v65_v4  ;;  %v1496_v14 = vpack.c.bf16 %v74_v10, %v71_v9  ;;  %v80_v16 = vand.u32 4294901760, %v53_v12  ;;  %v86_v21 = vand.u32 4294901760, %v55_v18  ;;  %v57_v23 = vld [vmem:[#allocation2 + $0x48] sm:$0xff]  ;;  %v1512_v28 = vld [vmem:[#allocation2 + $0x50] sm:$0xff]  ;;  %v1520_v32 = vld [vmem:[#allocation2 + $0x58] sm:$0xff] }
  0x19   :  { %v1506_v24 = vsub.f32 %v50_v5, %v71_v9  ;;  %v1508_v25 = vsub.f32 %v51_v6, %v74_v10  ;;  %v89_v26 = vand.u32 4294901760, %v56_v22  ;;  %v92_v27 = vand.u32 4294901760, %v57_v23  ;;  %v1536_v41 = vld [vmem:[#allocation2 + $0x60] sm:$0xff]  ;;  %v1540_v44 = vld [vmem:[#allocation2 + $0x68] sm:$0xff]  ;;  %v1564_v58 = vld [vmem:[#allocation2 + $0x70] sm:$0xff] }
  0x1a   :  { %40 = vperm.xlu0 %1366, %v33_v7   ;;  %1251 = vmatprep.subr.bf16.mxu0 %v1494_v13  ;;  %v1504_v19 = vpack.c.bf16 %v80_v16, %v77_v15  ;;  %v1518_v31 = vpack.c.bf16 %v86_v21, %v83_v20  ;;  %v95_v36 = vand.u32 4294901760, %v1512_v28  ;;  %v1527_v37 = vsub.f32 %v52_v11, %v77_v15  ;;  %v63_v61 = vld [vmem:[#allocation2 + $0x78] sm:$0xff] }
  0x1b   :  { %1155 = vmatprep.subr.bf16.mxu1 %v1494_v13  ;;  %1253 = vmatpush3.bf16.msra.mxu0 %v1494_v13  ;;  %v182_v29 = vand.u32 4294901760, %v1506_v24  ;;  %v189_v30 = vand.u32 4294901760, %v1508_v25  ;;  %v1529_v38 = vsub.f32 %v53_v12, %v80_v16  ;;  %v1533_v39 = vpack.c.bf16 %v92_v27, %v89_v26 }
  0x1c   :  { %1157 = vmatpush3.bf16.msra.mxu1 %v1494_v13  ;;  %1255 = vmatprep.subr.bf16.mxu0 %v1496_v14  ;;  %v98_v40 = vand.u32 4294901760, %v1520_v32  ;;  %v1542_v45 = vsub.f32 %v48_v2, %v65_v4  ;;  %v196_v47 = vand.u32 4294901760, %v1527_v37  ;;  %v1550_v50 = vsub.f32 %v54_v17, %v83_v20 }
  0x1d   :  { %1159 = vmatprep.subr.bf16.mxu1 %v1496_v14  ;;  %v1522_v33 = vpack.c.bf16 %v189_v30, %v182_v29  ;;  %v183_v34 = vsub.f32 %v1506_v24, %v182_v29  ;;  %v190_v35 = vsub.f32 %v1508_v25, %v189_v30  ;;  %v203_v48 = vand.u32 4294901760, %v1529_v38 }
  0x1e   :  { %v1552_v51 = vsub.f32 %v55_v18, %v86_v21  ;;  %v101_v52 = vand.u32 4294901760, %v1536_v41  ;;  %v197_v54 = vsub.f32 %v1527_v37, %v196_v47  ;;  %v1561_v56 = vpack.c.bf16 %v98_v40, %v95_v36 }
  0x1f   :  { %1257 = vmatpush3.bf16.msra.mxu0 %v1496_v14  ;;  %v184_v42 = vand.u32 4294901760, %v183_v34  ;;  %v191_v43 = vand.u32 4294901760, %v190_v35  ;;  %v1555_v53 = vpack.c.bf16 %v203_v48, %v196_v47  ;;  %v204_v55 = vsub.f32 %v1529_v38, %v203_v48 }
  0x20   :  { %1161 = vmatpush3.bf16.msra.mxu1 %v1496_v14  ;;  %1259 = vmatprep.subr.bf16.mxu0 %v1504_v19  ;;  %v104_v57 = vand.u32 4294901760, %v1540_v44  ;;  %v210_v59 = vand.u32 4294901760, %v1550_v50  ;;  %v217_v60 = vand.u32 4294901760, %v1552_v51  ;;  %v168_v62 = vand.u32 4294901760, %v1542_v45 }
  0x21   :  { %1163 = vmatprep.subr.bf16.mxu1 %v1504_v19  ;;  %v1548_v49 = vpack.c.bf16 %v191_v43, %v184_v42  ;;  %v175_v63 = vand.u32 4294901760, %v1544_v46  ;;  %v198_v0 = vand.u32 4294901760, %v197_v54  ;;  %v205_v1 = vand.u32 4294901760, %v204_v55 }
  0x22   :  { %v1572_v2 = vpack.c.bf16 %v217_v60, %v210_v59  ;;  %v211_v3 = vsub.f32 %v1550_v50, %v210_v59  ;;  %v218_v4 = vsub.f32 %v1552_v51, %v217_v60  ;;  %v1576_v5 = vsub.f32 %v56_v22, %v89_v26 }
  0x23   :  { %1261 = vmatpush3.bf16.msra.mxu0 %v1504_v19  ;;  %v107_v6 = vand.u32 4294901760, %v1564_v58  ;;  %v1579_v7 = vpack.c.bf16 %v205_v1, %v198_v0  ;;  %v1581_v8 = vsub.f32 %v57_v23, %v92_v27  ;;  %v110_v9 = vand.u32 4294901760, %v63_v61 }
  0x24   :  { %1165 = vmatpush3.bf16.msra.mxu1 %v1504_v19  ;;  %1263 = vmatprep.subr.bf16.mxu0 %v1518_v31  ;;  %v212_v10 = vand.u32 4294901760, %v211_v3  ;;  %v219_v11 = vand.u32 4294901760, %v218_v4  ;;  %v224_v12 = vand.u32 4294901760, %v1576_v5  ;;  %v1588_v15 = vpack.c.bf16 %v104_v57, %v101_v52 }
  0x25   :  { %1167 = vmatprep.subr.bf16.mxu1 %v1518_v31  ;;  %v169_v16 = vsub.f32 %v1542_v45, %v168_v62  ;;  %v176_v17 = vsub.f32 %v1544_v46, %v175_v63  ;;  %v231_v18 = vand.u32 4294901760, %v1581_v8  ;;  %v237_v22 = vsub.f32 %v1512_v28, %v95_v36 }
  0x26   :  { %v1593_v20 = vpack.c.bf16 %v219_v11, %v212_v10  ;;  %v225_v21 = vsub.f32 %v1576_v5, %v224_v12  ;;  %v244_v23 = vsub.f32 %v1520_v32, %v98_v40  ;;  %v1605_v35 = vpack.c.bf16 %v110_v9, %v107_v6 }
  0x27   :  { %1265 = vmatpush3.bf16.msra.mxu0 %v1518_v31  ;;  %v1598_v26 = vpack.c.bf16 %v231_v18, %v224_v12  ;;  %v232_v27 = vsub.f32 %v1581_v8, %v231_v18  ;;  %v238_v30 = vand.u32 4294901760, %v237_v22  ;;  %v170_v28 = vand.u32 4294901760, %v169_v16 }
  0x28   :  { %1169 = vmatpush3.bf16.msra.mxu1 %v1518_v31  ;;  %1267 = vmatprep.subr.bf16.mxu0 %v1533_v39  ;;  %v226_v29 = vand.u32 4294901760, %v225_v21  ;;  %v245_v34 = vand.u32 4294901760, %v244_v23  ;;  %v177_v36 = vand.u32 4294901760, %v176_v17  ;;  %v251_v47 = vsub.f32 %v1536_v41, %v101_v52 }
  0x29   :  { %1171 = vmatprep.subr.bf16.mxu1 %v1533_v39  ;;  %v233_v32 = vand.u32 4294901760, %v232_v27  ;;  %v239_v42 = vsub.f32 %v237_v22, %v238_v30  ;;  %v258_v54 = vsub.f32 %v1540_v44, %v104_v57  ;;  %v1282_v0 = vpack.c.bf16 %v175_v63, %v168_v62 }
  0x2a   :  { %v1607_v40 = vpack.c.bf16 %v245_v34, %v238_v30  ;;  %v246_v43 = vsub.f32 %v244_v23, %v245_v34  ;;  %v252_v60 = vand.u32 4294901760, %v251_v47  ;;  %v1186_v1 = vpack.c.bf16 %v177_v36, %v170_v28 }
  0x2b   :  { %1269 = vmatpush3.bf16.msra.mxu0 %v1533_v39  ;;  %v1610_v48 = vpack.c.bf16 %v233_v32, %v226_v29  ;;  %v240_v55 = vand.u32 4294901760, %v239_v42  ;;  %v259_v3 = vand.u32 4294901760, %v258_v54  ;;  %v265_v52 = vsub.f32 %v1564_v58, %v107_v6 }
  0x2c   :  { %1173 = vmatpush3.bf16.msra.mxu1 %v1533_v39  ;;  %1271 = vmatprep.subr.bf16.mxu0 %v1561_v56  ;;  %v247_v59 = vand.u32 4294901760, %v246_v43  ;;  %v253_v41 = vsub.f32 %v251_v47, %v252_v60  ;;  %v272_v44 = vsub.f32 %v63_v61, %v110_v9  ;;  %v1632_v9 = vpack.c.bf16 %v1544_v46, %v1542_v45 }
  0x2d   :  { %1175 = vmatprep.subr.bf16.mxu1 %v1561_v56  ;;  %v1620_v57 = vpack.c.bf16 %v259_v3, %v252_v60  ;;  %v260_v10 = vsub.f32 %v258_v54, %v259_v3  ;;  %v266_v12 = vand.u32 4294901760, %v265_v52  ;;  %v1636_v27 = vpack.c.bf16 %v1508_v25, %v1506_v24  ;;  %v750_v24 = vld [vmem:[%s1791_s1] sm:$0xff]  ;;  %v751_v25 = vld [vmem:[%s1791_s1 + $0x8] sm:$0xff]  ;;  %s1446_s1 = smov [#allocation5]  }
  0x2e   :  { %v1617_v4 = vpack.c.bf16 %v247_v59, %v240_v55  ;;  %v254_v11 = vand.u32 4294901760, %v253_v41  ;;  %v273_v16 = vand.u32 4294901760, %v272_v44  ;;  %v1640_v29 = vpack.c.bf16 %v1529_v38, %v1527_v37  ;;  %756 = vperm.xlu1 %1367, %v750_v24   ;;  %s802_s9 = sshll.u32 %s1446_s1, 4  ;;  %s803_s9 = int_to_ptr.vmem [resolvable:$true] %s802_s9 }
  0x2f   :  { %1273 = vmatpush3.bf16.msra.mxu0 %v1561_v56  ;;  %v261_v62 = vand.u32 4294901760, %v260_v10  ;;  %v267_v17 = vsub.f32 %v265_v52, %v266_v12  ;;  %v1644_v30 = vpack.c.bf16 %v1552_v51, %v1550_v50  ;;  %v1648_v34 = vpack.c.bf16 %v1581_v8, %v1576_v5  ;;  %s1390_s10 = scalar_lea.vmem %s803_s9, 256  ;;  %p1395_p9 = scmp.lt.s32.totalorder %s803_s9, %s803_s9 }
  0x30   :  { %1177 = vmatpush3.bf16.msra.mxu1 %v1561_v56  ;;  %1275 = vmatprep.subr.bf16.mxu0 %v1588_v15  ;;  %v1624_v63 = vpack.c.bf16 %v273_v16, %v266_v12  ;;  %v274_v18 = vsub.f32 %v272_v44, %v273_v16  ;;  %v1650_v28 = vpack.c.bf16 %v244_v23, %v237_v22  ;;  %v34_v37 = vlaneseq  ;;  %p1391_p8 = scmp.ne.s32.totalorder %s803_s9, %s1390_s10  ;;  %p1396_p10 = scmp.lt.s32.totalorder %s1390_s10, %s1390_s10 }
  0x31   :  { %1179 = vmatprep.subr.bf16.mxu1 %v1588_v15  ;;  %v1626_v21 = vpack.c.bf16 %v261_v62, %v254_v11  ;;  %v268_v58 = vand.u32 4294901760, %v267_v17  ;;  %v1652_v45 = vpack.c.bf16 %v258_v54, %v251_v47  ;;  %v1654_v46 = vpack.c.bf16 %v272_v44, %v265_v52 }
  0x32   :  { %v275_v61 = vand.u32 4294901760, %v274_v18  ;;  %759 = vperm.xlu1 %1367, %v751_v25   ;;  %v1662_v38 = vand.u32 127, %v34_v37  ;;  %v1444_v51 = vmov 0.0   ;;  %v1445_v55 = vmov 1.0   ;;  %p1397_p11 = por %p1396_p10, %p1395_p9 }
  0x33   :  { %1277 = vmatpush3.bf16.msra.mxu0 %v1588_v15 }
  0x34   :  { %1181 = vmatpush3.bf16.msra.mxu1 %v1588_v15  ;;  %1279 = vmatprep.subr.bf16.mxu0 %v1605_v35  ;;  %v1628_v6 = vpack.c.bf16 %v275_v61, %v268_v58  ;;  %vm752_vm2 = vcmp.eq.s32.totalorder %v1662_v38, 65  ;;  %p1398_p12 = pnand %p1397_p11, %p1391_p8 }
  0x35   :  { %1183 = vmatprep.subr.bf16.mxu1 %v1605_v35 }
  0x37   :  { %1281 = vmatpush3.bf16.msra.mxu0 %v1605_v35 }
  0x38   :  { %1185 = vmatpush3.bf16.msra.mxu1 %v1605_v35  ;;  %1283 = vmatprep.subr.bf16.mxu0 %v1282_v0 }
  0x39   :  { %1187 = vmatprep.subr.bf16.mxu1 %v1186_v1 }
  0x95   :  { %v38_v50 = vpop.permute.xlu0 %37 }
  0x96   :  { %vm42_vm0 = vcmp.eq.s32.totalorder %v1662_v38, %v38_v50 }
  0x97   :  { %v828_v5 = vsel %vm42_vm0, 1.0, %v1444_v51 }
  0x98   :  { %v146_v8 = vsub.f32 %v828_v5, %v828_v5 }
  0x99   :  { %v1667_v22 = vpop.permute.xlu0 %40 }
  0x9a   :  { %vm43_vm1 = vcmp.eq.s32.totalorder %v1662_v38, %v1667_v22  ;;  %v147_v23 = vand.u32 4294901760, %v146_v8 }
  0x9b   :  { %v829_v36 = vsel %vm43_vm1, 1.0, %v1444_v51 }
  0x9c   :  { %v1674_v32 = vsub.f32 %v829_v36, %v829_v36  ;;  %1081 = vmatprep.mubr.f32.mxu0 %v147_v23  ;;  %v148_v42 = vsub.f32 %v146_v8, %v147_v23 }
  0x9e   :  { %v149_v43 = vand.u32 4294901760, %v148_v42  ;;  %v157_v47 = vand.u32 4294901760, %v1674_v32 }
  0xa0   :  { %976 = vmatprep.mubr.f32.mxu1 %v149_v43  ;;  %1082 = vmatmul.mubr.f32.vlgmr.msra.gmra.mrb[0].mxu0 %v157_v47  ;;  %v158_v54 = vsub.f32 %v1674_v32, %v157_v47 }
  0xa1   :  { %1285 = vmatpush3.bf16.msra.mxu0 %v1282_v0  ;;  %1116 = vmatprep.mubr.msk.f32.mxu0 %vm42_vm0, %v1445_v55 }
  0xa2   :  { %1287 = vmatprep.subr.bf16.mxu0 %v1522_v33  ;;  %v159_v59 = vand.u32 4294901760, %v158_v54 }
  0xa4   :  { %977 = vmatmul.mubr.f32.vlgmr.msra.gmra.mrb[0].mxu1 %v159_v59 }
  0xa5   :  { %1189 = vmatpush3.bf16.msra.mxu1 %v1186_v1  ;;  %1289 = vmatpush3.bf16.msra.mxu0 %v1522_v33 }
  0xa6   :  { %1011 = vmatprep.mubr.msk.f32.mxu1 %vm42_vm0, %v1445_v55  ;;  %1191 = vmatprep.subr.bf16.mxu1 %v1548_v49 }
  0xa7   :  { %1291 = vmatprep.subr.bf16.mxu0 %v1555_v53 }
  0xa9   :  { %1193 = vmatpush3.bf16.msra.mxu1 %v1548_v49  ;;  %1293 = vmatpush3.bf16.msra.mxu0 %v1555_v53 }
  0xaa   :  { %1195 = vmatprep.subr.bf16.mxu1 %v1579_v7  ;;  %1295 = vmatprep.subr.bf16.mxu0 %v1572_v2 }
  0xad   :  { %1197 = vmatpush3.bf16.msra.mxu1 %v1579_v7  ;;  %1297 = vmatpush3.bf16.msra.mxu0 %v1572_v2 }
  0xae   :  { %1199 = vmatprep.subr.bf16.mxu1 %v1593_v20  ;;  %1299 = vmatprep.subr.bf16.mxu0 %v1598_v26 }
  0xb1   :  { %1201 = vmatpush3.bf16.msra.mxu1 %v1593_v20  ;;  %1301 = vmatpush3.bf16.msra.mxu0 %v1598_v26 }
  0xb2   :  { %1203 = vmatprep.subr.bf16.mxu1 %v1610_v48  ;;  %1303 = vmatprep.subr.bf16.mxu0 %v1607_v40 }
  0xb5   :  { %1205 = vmatpush3.bf16.msra.mxu1 %v1610_v48  ;;  %1305 = vmatpush3.bf16.msra.mxu0 %v1607_v40 }
  0xb6   :  { %1207 = vmatprep.subr.bf16.mxu1 %v1617_v4  ;;  %1307 = vmatprep.subr.bf16.mxu0 %v1620_v57 }
  0xb9   :  { %1209 = vmatpush3.bf16.msra.mxu1 %v1617_v4  ;;  %1309 = vmatpush3.bf16.msra.mxu0 %v1620_v57 }
  0xba   :  { %1211 = vmatprep.subr.bf16.mxu1 %v1626_v21  ;;  %1311 = vmatprep.subr.bf16.mxu0 %v1624_v63 }
  0xbd   :  { %1213 = vmatpush3.bf16.msra.mxu1 %v1626_v21  ;;  %1313 = vmatpush3.bf16.msra.mxu0 %v1624_v63 }
  0xbe   :  { %1215 = vmatprep.subr.bf16.mxu1 %v1628_v6  ;;  %1315 = vmatprep.subr.bf16.mxu0 %v1494_v13 }
  0xc0   :  { %1117 = vmatmul.mubr.msk.f32.vlgmr.msra.gmra.mrb[0].mxu0 %vm43_vm1, %v1445_v55 }
  0xc1   :  { %1217 = vmatpush3.bf16.msra.mxu1 %v1628_v6  ;;  %1317 = vmatpush3.bf16.msra.mxu0 %v1494_v13  ;;  %v757_v13 = vpop.permute.xlu1 %756 }
  0xc2   :  { %1151 = vmatprep.mubr.msk.f32.mxu0 %vm42_vm0, %v1445_v55  ;;  %1219 = vmatprep.subr.bf16.mxu1 %v1632_v9  ;;  %vm761_vm4 = vcmp.eq.s32.totalorder %v1662_v38, %v757_v13 }
  0xc3   :  { %1319 = vmatprep.subr.bf16.mxu0 %v1496_v14 }
  0xc4   :  { %1012 = vmatmul.mubr.msk.f32.vlgmr.msra.gmra.mrb[0].mxu1 %vm43_vm1, %v1445_v55 }
  0xc5   :  { %1221 = vmatpush3.bf16.msra.mxu1 %v1632_v9  ;;  %1046 = vmatprep.mubr.f32.mxu1 %v146_v8 }
  0xc6   :  { %1321 = vmatpush3.bf16.msra.mxu0 %v1496_v14  ;;  %1223 = vmatprep.subr.bf16.mxu1 %v1636_v27 }
  0xc7   :  { %1323 = vmatprep.subr.bf16.mxu0 %v1504_v19 }
  0xc9   :  { %1225 = vmatpush3.bf16.msra.mxu1 %v1636_v27 }
  0xca   :  { %1325 = vmatpush3.bf16.msra.mxu0 %v1504_v19  ;;  %1227 = vmatprep.subr.bf16.mxu1 %v1640_v29 }
  0xcb   :  { %1327 = vmatprep.subr.bf16.mxu0 %v1518_v31 }
  0xcd   :  { %1229 = vmatpush3.bf16.msra.mxu1 %v1640_v29 }
  0xce   :  { %1329 = vmatpush3.bf16.msra.mxu0 %v1518_v31  ;;  %1231 = vmatprep.subr.bf16.mxu1 %v1644_v30  ;;  %v760_v31 = vpop.permute.xlu1 %759 }
  0xcf   :  { %1331 = vmatprep.subr.bf16.mxu0 %v1533_v39  ;;  %vm762_vm3 = vcmp.eq.s32.totalorder %v1662_v38, %v760_v31 }
  0xd1   :  { %1233 = vmatpush3.bf16.msra.mxu1 %v1644_v30 }
  0xd2   :  { %1333 = vmatpush3.bf16.msra.mxu0 %v1533_v39  ;;  %1235 = vmatprep.subr.bf16.mxu1 %v1648_v34 }
  0xd3   :  { %1335 = vmatprep.subr.bf16.mxu0 %v1561_v56 }
  0xd5   :  { %1237 = vmatpush3.bf16.msra.mxu1 %v1648_v34 }
  0xd6   :  { %1337 = vmatpush3.bf16.msra.mxu0 %v1561_v56  ;;  %1239 = vmatprep.subr.bf16.mxu1 %v1650_v28 }
  0xd7   :  { %1339 = vmatprep.subr.bf16.mxu0 %v1588_v15 }
  0xd9   :  { %1241 = vmatpush3.bf16.msra.mxu1 %v1650_v28 }
  0xda   :  { %1341 = vmatpush3.bf16.msra.mxu0 %v1588_v15  ;;  %1243 = vmatprep.subr.bf16.mxu1 %v1652_v45 }
  0xdb   :  { %1343 = vmatprep.subr.bf16.mxu0 %v1605_v35 }
  0xdd   :  { %1245 = vmatpush3.bf16.msra.mxu1 %v1652_v45 }
  0xde   :  { %1345 = vmatpush3.bf16.msra.mxu0 %v1605_v35  ;;  %1247 = vmatprep.subr.bf16.mxu1 %v1654_v46 }
  0xe1   :  { %1152 = vmatmul.mubr.msk.f32.vlgmr.msra.gmra.mrb[0].mxu0 %vm43_vm1, %v1445_v55  ;;  %1249 = vmatpush3.bf16.msra.mxu1 %v1654_v46 }
  0xe4   :  { %1047 = vmatmul.mubr.f32.vlgmr.msra.gmra.mrb[0].mxu1 %v1674_v32 }
 0x1b4   :  { %v1153_v14 = vpop.f32.mrb[0].mxu0 }
 0x1b5   :  { %v738_v19 = vpop.f32.mrb[1].mxu0 }
 0x1b7   :  { %v1048_v33 = vpop.f32.mrb[0].mxu1 }
 0x1b8   :  { %v1346_v39 = vadd.f32 %v1153_v14, %v1048_v33  ;;  %v422_v49 = vpop.f32.mrb[1].mxu1 }
 0x1b9   :  { %v1347_v53 = vadd.f32 %v738_v19, %v422_v49 }
 0x1ba   :  { %749 = vst [vmem:[#allocation5 + $0x8] sm:$0xff] %v1346_v39  ;;  %v754_v56 = vsel %vm752_vm2, %v1346_v39, 0.0  ;;  %v764_v2 = vsel %vm762_vm3, %v1346_v39, 0.0 }
 0x1bb   :  { %748 = vst [vmem:[#allocation5] sm:$0xff] %v1347_v53  ;;  %v766_v7 = vsub.f32 %v754_v56, %v764_v2  ;;  %v753_v15 = vsel %vm752_vm2, %v1347_v53, 0.0  ;;  %v763_v20 = vsel %vm761_vm4, %v1347_v53, 0.0 }
 0x1bc   :  { %v765_v26 = vsub.f32 %v753_v15, %v763_v20 }
 0x1bd   :  { %769 = vadd.xlane.f32.xlu1 %v766_v7 }
 0x1be   :  { %767 = vadd.xlane.f32.xlu0 %v765_v26 }
 0x24a   :  { %v770_v35 = vpop.xlane.xlu1 %769 }
 0x24b   :  { %v784_v40 = vsel %vm782_vm5, %v770_v35, 0.0  ;;  %v768_v48 = vpop.xlane.xlu0 %767 }
 0x24c   :  { %v783_v60 = vsel %vm782_vm5, %v768_v48, 0.0 }
 0x24d   :  { %v785_v0 = vadd.f32 %v784_v40, %v783_v60 }
 0x24f   :  { %786 = vadd.xlane.f32.xlu0 %v785_v0 }
 0x250   :  { %1401 = shalt.err (!%p1398_p12)
}
 0x251   :  { %s1402_s13 = scalar_lea.hbm %s1793_s3, 256 }
 0x252   :  { %p1403_p13 = scmp.ne.s32.totalorder %s1793_s3, %s1402_s13  ;;  %p1406_p0 = scmp.lt.u32.totalorder %s1402_s13, %s1793_s3 }
 0x254   :  { %p1408_p1 = pnand %p1406_p0, %p1403_p13 }
 0x256   :  { %1411 = shalt.err (!%p1408_p1)
}
 0x257   :  { %808 = dma.vmem_to_hbm [thread:$0]  %s803_s9, 256, %s1793_s3, [#allocation4], %s1441_s25, %s1441_s25, %s1442_s26  }
 0x258   :  { %s1447_s20 = smov [#allocation6]  }
 0x259   :  { %s815_s21 = sshll.u32 %s1447_s20, 4  ;;  %s816_s21 = int_to_ptr.vmem [resolvable:$true] %s815_s21 }
 0x25a   :  { %s1412_s23 = scalar_lea.vmem %s816_s21, 16  ;;  %s1416_s24 = scalar_lea.vmem %s816_s21, 32 }
 0x25b   :  { %p1413_p2 = scmp.ne.s32.totalorder %s816_s21, %s1412_s23  ;;  %p1417_p3 = scmp.lt.s32.totalorder %s816_s21, %s816_s21 }
 0x25c   :  { %p1418_p4 = scmp.lt.s32.totalorder %s1416_s24, %s1412_s23 }
 0x25e   :  { %p1419_p5 = por %p1418_p4, %p1417_p3 }
 0x260   :  { %p1420_p6 = pnand %p1419_p5, %p1413_p2 }
 0x2dc   :  { %v787_v1 = vpop.xlane.xlu0 %786 }
 0x2dd   :  { %v788_v3 = vrot.slane %v787_v1, 4 }
 0x2df   :  { %v789_v4 = vadd.f32 %v788_v3, %v787_v1 }
 0x2e1   :  { %v790_v41 = vrot.slane %v789_v4, 2 }
 0x2e3   :  { %v791_v52 = vadd.f32 %v790_v41, %v789_v4 }
 0x2e5   :  { %v792_v44 = vrot.slane %v791_v52, 1 }
 0x2e7   :  { %v793_v57 = vadd.f32 %v792_v44, %v791_v52 }
 0x2e9   :  { %1356 = vpush %v793_v57 }
 0x31a   :  { %s1357_s22 = spop %1356 }
 0x31b   :  { %v795_v10 = vstv %s1357_s22 }
 0x31c   :  { %796 = vst [vmem:[#allocation6] sm:$0x1] %v795_v10 }
 0x31d   :  { %1423 = shalt.err (!%p1420_p6)
}
 0x31e   :  { %s1424_s26 = scalar_lea.hbm %s1794_s4, 16 }
 0x31f   :  { %p1425_p7 = scmp.ne.s32.totalorder %s1794_s4, %s1424_s26  ;;  %p1428_p8 = scmp.lt.u32.totalorder %s1424_s26, %s1794_s4 }
 0x321   :  { %p1430_p9 = pnand %p1428_p8, %p1425_p7 }
 0x323   :  { %1433 = shalt.err (!%p1430_p9)
}
 0x324   :  { %818 = dma.vmem_to_hbm [thread:$0]  %s816_s21, 16, %s1794_s4, [#allocation7]  }
 0x325   :  { %1436 = dma.done.wait [#allocation4], 256  }
 0x326   :  { %1437 = vsyncadd [#allocation4], 4294967040 }
 0x327   :  { %1438 = dma.done.wait [#allocation7], 16  }
 0x328   :  { %1439 = vsyncadd [#allocation7], 4294967280 }
 0x329   :  { %825 = vsyncpa [#allocation3], 1 }
 0x32a   :  { %826 = vsyncpa [#allocation4], 1 }
 0x32b   :  { %827 = vsyncpa [#allocation7], 1 }

</bundles_post_ra>
